<compile_context>
chip_gen: v7x
topology: tpu7x:2x2x1
jax: 0.10.0
libtpu: 0.0.40
codegen_flags: <defaults>
</compile_context>

<pallas_src>
import jax
import jax.numpy as jnp
from jax.experimental import pallas as pl
from jax.experimental.pallas import tpu as pltpu

# ---- module config ----------------------------------------------------------
FEAT_DIM = 32
EMBEDDING_DIM = 16
NUM_CLASSES = 24
SCALE = 1.0
BN_EPS = 1e-5

_LANES = 128


# ---- wrapper + kernel -------------------------------------------------------
@jax.jit
def embedding_head_forward(features, conv_w, cls_w):
    """features: (N, C, H, W) float32 (NCHW, as in PyTorch).
       conv_w:   (E, C, 1, 1)  Conv2d weight (bias=False).
       cls_w:    (K, E)        classifier weight.
    Returns (cls_outputs, pred_class_logits, features_before_neck)."""
    N, C, H, W = features.shape
    E = conv_w.shape[0]
    K = cls_w.shape[0]
    HW = H * W
    inv_hw = 1.0 / float(HW)

    # (N, C, H, W) -> (N, C, H*W): contiguous, metadata-only reshape -- nothing is
    # materialized in HBM, the spatial reduce happens in-kernel on the lane axis.
    x3 = features.reshape(N, C, HW)

    # Pack both weight matrices into one lane-dense slab -> a single input DMA.
    #   rows [0, C)   : conv_w^T (C, E) in lanes [0, E)
    #   rows [C, C+E) : cls_w^T  (E, K) in lanes [0, K)
    # (In a real model this slab is built once at parameter-prep time, not per call.)
    w_slab = jnp.zeros((C + E, _LANES), jnp.float32)
    w_slab = w_slab.at[:C, :E].set(conv_w.reshape(E, C).T.astype(jnp.float32))
    w_slab = w_slab.at[C:, :K].set(cls_w.T.astype(jnp.float32))

    def kernel(x_ref, w_ref, cls_ref, feat_ref):
        x = x_ref[...]
        if x.dtype != jnp.float32:                    # trace-time guard only; no-op for f32
            x = x.astype(jnp.float32)                 # (bf16 activations accumulate in f32)

        # 1) GlobalAvgPool over the spatial (lane) axis; scale once by 1/HW.
        #    Result is already (N, C) in the layout the conv matmul wants -- kept
        #    as a register value (no out_ref scratch round-trip).
        pool = jnp.sum(x, axis=-1) * inv_hw                                  # (N, C)

        w = w_ref[...]                                                        # (C+E, 128)

        # 2) bottleneck 1x1 conv (bias=False): (N, C) @ (C, E) -> (N, E)
        emb = jnp.dot(pool, w[:C, :E], preferred_element_type=jnp.float32)

        # 3) BatchNorm2d (training-mode batch stats), gamma=1, beta=0 (frozen)
        mean = jnp.mean(emb, axis=0, keepdims=True)
        var = jnp.mean((emb - mean) ** 2, axis=0, keepdims=True)              # biased var (PyTorch BN)
        neck = (emb - mean) * jax.lax.rsqrt(var + BN_EPS)                     # (N, E)

        # 4) classifier logits: F.linear(neck, W) == neck @ W^T -> (N, K)
        #    Each output is written exactly once with a whole-ref store.
        cls_ref[...] = jnp.dot(neck, w[C:C + E, :K],
                               preferred_element_type=jnp.float32)
        # neck_feat == 'before' -> features are the pooled, pre-bottleneck ones.
        feat_ref[...] = pool

    cls_outputs, feat = pl.pallas_call(
        kernel,
        out_shape=(jax.ShapeDtypeStruct((N, K), jnp.float32),
                   jax.ShapeDtypeStruct((N, C), jnp.float32)),
        in_specs=[pl.BlockSpec(memory_space=pltpu.MemorySpace.VMEM),
                  pl.BlockSpec(memory_space=pltpu.MemorySpace.VMEM)],
        out_specs=(pl.BlockSpec(memory_space=pltpu.MemorySpace.VMEM),
                   pl.BlockSpec(memory_space=pltpu.MemorySpace.VMEM)),
    )(x3, w_slab)

    # pred_class_logits = logits * cls_layer.s ; SCALE is a compile-time 1.0 -> alias.
    pred_class_logits = cls_outputs if SCALE == 1.0 else cls_outputs * SCALE
    return cls_outputs, pred_class_logits, feat


# ---- pure-JAX reference (for verification) ----------------------------------
def embedding_head_ref(features, conv_w, cls_w):
    N, C, H, W = features.shape
    E = conv_w.shape[0]
    pool = jnp.mean(features.reshape(N, C, H * W), axis=-1)           # (N, C)
    emb = pool @ conv_w.reshape(E, C).T                               # (N, E)
    mean = jnp.mean(emb, axis=0, keepdims=True)
    var = jnp.mean((emb - mean) ** 2, axis=0, keepdims=True)
    neck = (emb - mean) * jax.lax.rsqrt(var + BN_EPS)
    logits = neck @ cls_w.T                                           # (N, K)
    return logits, logits * SCALE, pool


if __name__ == "__main__":
    key = jax.random.PRNGKey(0)
    k_feat, k_conv, k_cls = jax.random.split(key, 3)

    N, C, H, W = 4, FEAT_DIM, 8, 8
    features = jax.random.normal(k_feat, (N, C, H, W), dtype=jnp.float32)

    # Conv2d weight: kaiming_normal fan_out (weights_init_kaiming) -> std = sqrt(2 / (E*1*1))
    conv_w = jax.random.normal(k_conv, (EMBEDDING_DIM, FEAT_DIM, 1, 1),
                               dtype=jnp.float32) * jnp.sqrt(2.0 / EMBEDDING_DIM)
    # Classifier weight: normal(std=0.01)
    cls_w = jax.random.normal(k_cls, (NUM_CLASSES, EMBEDDING_DIM),
                              dtype=jnp.float32) * 0.01

    cls_outputs, pred_class_logits, feat = jax.block_until_ready(
        embedding_head_forward(features, conv_w, cls_w))

    ref_cls, ref_pred, ref_feat = embedding_head_ref(features, conv_w, cls_w)
    assert jnp.allclose(cls_outputs, ref_cls, atol=1e-5, rtol=1e-5)
    assert jnp.allclose(pred_class_logits, ref_pred, atol=1e-5, rtol=1e-5)
    assert jnp.allclose(feat, ref_feat, atol=1e-5, rtol=1e-5)

    print("KERNEL_OK")
</pallas_src>

<mosaic_0001>
module attributes {stable_mosaic.version = 11 : i64} {
  func.func @kernel(%arg0: memref<4x32x64xf32, #tpu.memory_space<vmem>>, %arg1: memref<48x128xf32, #tpu.memory_space<vmem>>, %arg2: memref<4x24xf32, #tpu.memory_space<vmem>>, %arg3: memref<4x32xf32, #tpu.memory_space<vmem>>) attributes {dimension_semantics = [], scalar_prefetch = 0 : i64, scratch_operands = 0 : i64, tpu.core_type = #tpu.core_type<tc>} {
    %c0 = arith.constant 0 : index
    %c0_0 = arith.constant 0 : index
    %c0_1 = arith.constant 0 : index
    %0 = vector.load %arg0[%c0, %c0_0, %c0_1] : memref<4x32x64xf32, #tpu.memory_space<vmem>>, vector<4x32x64xf32>
    %cst = arith.constant dense<0.000000e+00> : vector<4x32xf32>
    %1 = vector.multi_reduction <add>, %0, %cst [2] : vector<4x32x64xf32> to vector<4x32xf32>
    %cst_2 = arith.constant 1.562500e-02 : f32
    %2 = vector.broadcast %cst_2 : f32 to vector<4x32xf32>
    %3 = arith.mulf %1, %2 : vector<4x32xf32>
    %c0_3 = arith.constant 0 : index
    %c0_4 = arith.constant 0 : index
    %4 = vector.load %arg1[%c0_3, %c0_4] : memref<48x128xf32, #tpu.memory_space<vmem>>, vector<48x128xf32>
    %5 = vector.extract_strided_slice %4 {offsets = [0, 0], sizes = [32, 16], strides = [1, 1]} : vector<48x128xf32> to vector<32x16xf32>
    %cst_5 = arith.constant dense<0.000000e+00> : vector<4x16xf32>
    %6 = tpu.matmul %3, %5, %cst_5 {dimension_numbers = #tpu.dot_dimension_numbers<[1], [0], [0], [1], [0, 0, 1, 1], [], []>} : vector<4x32xf32>, vector<32x16xf32>, vector<4x16xf32> -> vector<4x16xf32>
    %cst_6 = arith.constant dense<0.000000e+00> : vector<16xf32>
    %7 = vector.multi_reduction <add>, %6, %cst_6 [0] : vector<4x16xf32> to vector<16xf32>
    %8 = vector.shape_cast %7 : vector<16xf32> to vector<1x16xf32>
    %cst_7 = arith.constant 4.000000e+00 : f32
    %9 = vector.broadcast %cst_7 : f32 to vector<1x16xf32>
    %10 = arith.divf %8, %9 : vector<1x16xf32>
    %11 = vector.broadcast %10 : vector<1x16xf32> to vector<4x16xf32>
    %12 = arith.subf %6, %11 : vector<4x16xf32>
    %13 = arith.mulf %12, %12 : vector<4x16xf32>
    %cst_8 = arith.constant dense<0.000000e+00> : vector<16xf32>
    %14 = vector.multi_reduction <add>, %13, %cst_8 [0] : vector<4x16xf32> to vector<16xf32>
    %15 = vector.shape_cast %14 : vector<16xf32> to vector<1x16xf32>
    %cst_9 = arith.constant 4.000000e+00 : f32
    %16 = vector.broadcast %cst_9 : f32 to vector<1x16xf32>
    %17 = arith.divf %15, %16 : vector<1x16xf32>
    %18 = vector.broadcast %10 : vector<1x16xf32> to vector<4x16xf32>
    %19 = arith.subf %6, %18 : vector<4x16xf32>
    %cst_10 = arith.constant 9.99999974E-6 : f32
    %20 = vector.broadcast %cst_10 : f32 to vector<1x16xf32>
    %21 = arith.addf %17, %20 : vector<1x16xf32>
    %22 = math.rsqrt %21 : vector<1x16xf32>
    %23 = vector.broadcast %22 : vector<1x16xf32> to vector<4x16xf32>
    %24 = arith.mulf %19, %23 : vector<4x16xf32>
    %25 = vector.extract_strided_slice %4 {offsets = [32, 0], sizes = [16, 24], strides = [1, 1]} : vector<48x128xf32> to vector<16x24xf32>
    %cst_11 = arith.constant dense<0.000000e+00> : vector<4x24xf32>
    %26 = tpu.matmul %24, %25, %cst_11 {dimension_numbers = #tpu.dot_dimension_numbers<[1], [0], [0], [1], [0, 0, 1, 1], [], []>} : vector<4x16xf32>, vector<16x24xf32>, vector<4x24xf32> -> vector<4x24xf32>
    %c0_12 = arith.constant 0 : index
    %c0_13 = arith.constant 0 : index
    %27 = vector.load %arg2[%c0_12, %c0_13] : memref<4x24xf32, #tpu.memory_space<vmem>>, vector<4x24xf32>
    tpu.vector_store %arg2[%c0_12, %c0_13], %26 {strides = array<i32>} : memref<4x24xf32, #tpu.memory_space<vmem>>, vector<4x24xf32>,
    %c0_14 = arith.constant 0 : index
    %c0_15 = arith.constant 0 : index
    %28 = vector.load %arg3[%c0_14, %c0_15] : memref<4x32xf32, #tpu.memory_space<vmem>>, vector<4x32xf32>
    tpu.vector_store %arg3[%c0_14, %c0_15], %3 {strides = array<i32>} : memref<4x32xf32, #tpu.memory_space<vmem>>, vector<4x32xf32>,
    return
  }
}

</mosaic_0001>

<bundles_post_ra>
// kernel: embedding_head_forward.1
= control target key start
LH: loop header
LB: loop body
LE: loop exit
PB: predicated region body
PF: predicated region fallthrough
CT: control target
= control target key end

     0   :  { %vm30_vm0 = vcmask 523264   ;;  %s601_s0 = inlined_call_operand.vmem [shape: f32[4,32,64], index: 0, kind: input, shape index: {}]   ;;  %s602_s1 = inlined_call_operand.vmem [shape: f32[48,128], index: 1, kind: input, shape index: {}]   ;;  %s603_s2 = inlined_call_operand.vmem [shape: f32[4,24], index: 2, kind: output, shape index: {0}]   ;;  %s604_s3 = inlined_call_operand.hbm [shape: f32[4,32], index: 3, kind: output, shape index: {1}]  }
   0x1   :  { %v18_v0 = vld [vmem:[%s601_s0 + $0x20] sm:$0xff]  ;;  %v19_v2 = vld [vmem:[%s601_s0 + $0x28] sm:$0xff]  ;;  %v20_v8 = vld [vmem:[%s601_s0 + $0x30] sm:$0xff] }
   0x2   :  { %v14_v1 = vld [vmem:[%s601_s0] sm:$0xff]  ;;  %v43_v3 = vsel %vm30_vm0, %v18_v0, 0.0  ;;  %v15_v5 = vld [vmem:[%s601_s0 + $0x8] sm:$0xff]  ;;  %v46_v6 = vsel %vm30_vm0, %v19_v2, 0.0  ;;  %v16_v9 = vld [vmem:[%s601_s0 + $0x10] sm:$0xff] }
   0x3   :  { %v31_v4 = vsel %vm30_vm0, %v14_v1, 0.0  ;;  %44 = vadd.xlane.f32.xlu1 %v43_v3  ;;  %v34_v7 = vsel %vm30_vm0, %v15_v5, 0.0 }
   0x4   :  { %32 = vadd.xlane.f32.xlu0 %v31_v4 }
   0x7   :  { %47 = vadd.xlane.f32.xlu1 %v46_v6 }
   0x8   :  { %35 = vadd.xlane.f32.xlu0 %v34_v7 }
   0x9   :  { %9 = vsyncpa [#allocation3], 0  ;;  %v49_v10 = vsel %vm30_vm0, %v20_v8, 0.0  ;;  %v37_v11 = vsel %vm30_vm0, %v16_v9, 0.0  ;;  %v23_v12 = vld [vmem:[%s601_s0 + $0x48] sm:$0xff]  ;;  %v22_v13 = vld [vmem:[%s601_s0 + $0x40] sm:$0xff]  ;;  %v117_v46 = vlaneseq }
   0xa   :  { %v58_v14 = vsel %vm30_vm0, %v23_v12, 0.0  ;;  %v55_v15 = vsel %vm30_vm0, %v22_v13, 0.0  ;;  %v21_v16 = vld [vmem:[%s601_s0 + $0x38] sm:$0xff]  ;;  %v26_v20 = vld [vmem:[%s601_s0 + $0x60] sm:$0xff]  ;;  %v24_v21 = vld [vmem:[%s601_s0 + $0x50] sm:$0xff]  ;;  %v467_v35 = vmov 0.0|0.0  }
   0xb   :  { %50 = vadd.xlane.f32.xlu1 %v49_v10  ;;  %v17_v17 = vld [vmem:[%s601_s0 + $0x18] sm:$0xff]  ;;  %v52_v18 = vsel %vm30_vm0, %v21_v16, 0.0  ;;  %v67_v22 = vsel %vm30_vm0, %v26_v20, 0.0  ;;  %v61_v23 = vsel %vm30_vm0, %v24_v21, 0.0  ;;  %v27_v25 = vld [vmem:[%s601_s0 + $0x68] sm:$0xff]  ;;  %v28_v28 = vld [vmem:[%s601_s0 + $0x70] sm:$0xff]  ;;  %428 = vmatprep.subr.bf16.mxu0 %v467_v35 }
   0xc   :  { %38 = vadd.xlane.f32.xlu0 %v37_v11  ;;  %v40_v19 = vsel %vm30_vm0, %v17_v17, 0.0  ;;  %v25_v24 = vld [vmem:[%s601_s0 + $0x58] sm:$0xff]  ;;  %v70_v27 = vsel %vm30_vm0, %v27_v25, 0.0  ;;  %v73_v30 = vsel %vm30_vm0, %v28_v28, 0.0  ;;  %v95_v32 = vld [vmem:[%s602_s1] sm:$0xff]  ;;  %v96_v33 = vld [vmem:[%s602_s1 + $0x8] sm:$0xff]  ;;  %434 = vmatprep.subr.bf16.mxu1 %v467_v35 }
   0xd   :  { %v64_v26 = vsel %vm30_vm0, %v25_v24, 0.0  ;;  %v29_v29 = vld [vmem:[%s601_s0 + $0x78] sm:$0xff]  ;;  %v429_v34 = vpack.c.bf16 %v96_v33, %v95_v32  ;;  %v97_v36 = vld [vmem:[%s602_s1 + $0x10] sm:$0xff]  ;;  %vm468_vm1 = vmmov 0   ;;  %v469_v39 = vmov 0.0  }
   0xe   :  { %v76_v31 = vsel %vm30_vm0, %v29_v29, 0.0  ;;  %v98_v37 = vld [vmem:[%s602_s1 + $0x18] sm:$0xff]  ;;  %418 = vmatprep.mubr.msk.f32.mxu0 %vm468_vm1, %v469_v39  ;;  %425 = vmatprep.mubr.msk.f32.mxu1 %vm468_vm1, %v469_v39  ;;  %v118_v49 = vand.u32 127, %v117_v46  ;;  %v120_v50 = vshrl.u32 %v117_v46, 7  ;;  %vm128_vm2 = vcmask 130112  }
   0xf   :  { %59 = vadd.xlane.f32.xlu1 %v58_v14  ;;  %430 = vmatpush3.bf16.msra.mxu0 %v429_v34  ;;  %v432_v38 = vpack.c.bf16 %v98_v37, %v97_v36  ;;  %vm135_vm3 = vcmask 195712   ;;  %vm142_vm4 = vcmask 261312   ;;  %vm201_vm5 = vcmask 1041409  }
  0x10   :  { %56 = vadd.xlane.f32.xlu0 %v55_v15  ;;  %431 = vmatprep.subr.bf16.mxu0 %v467_v35  ;;  %v123_v51 = vadd.s32 4294967288, %v118_v49  ;;  %v130_v52 = vadd.s32 4294967280, %v118_v49  ;;  %v121_v55 = vsub.s32 %v118_v49, %v120_v50  ;;  %v137_v56 = vadd.s32 4294967272, %v118_v49  ;;  %v99_v49 = vld [vmem:[%s602_s1 + $0x20] sm:$0xff] }
  0x11   :  { %vm203_vm6 = vcmask 1042434   ;;  %vm205_vm7 = vcmask 1043459   ;;  %vm207_vm8 = vcmask 261120   ;;  %vm380_vm9 = vcmask 257024  }
  0x12   :  { %v126_v58 = vsub.s32 %v123_v51, %v120_v50  ;;  %v133_v60 = vsub.s32 %v130_v52, %v120_v50  ;;  %v140_v5 = vsub.s32 %v137_v56, %v120_v50  ;;  %v100_v50 = vld [vmem:[%s602_s1 + $0x28] sm:$0xff]  ;;  %vm280_vm10 = vcmask 125952   ;;  %s470_s1 = smov [#allocation2]  }
  0x13   :  { %53 = vadd.xlane.f32.xlu1 %v52_v18  ;;  %433 = vmatpush3.bf16.msra.mxu0 %v432_v38  ;;  %v435_v51 = vpack.c.bf16 %v100_v50, %v99_v49  ;;  %vm303_vm11 = vcmask 130048   ;;  %s390_s28 = sshll.u32 %s470_s1, 4  ;;  %s391_s28 = int_to_ptr.vmem [resolvable:$true] %s390_s28 }
  0x14   :  { %41 = vadd.xlane.f32.xlu0 %v40_v19  ;;  %s443_s29 = scalar_lea.vmem %s391_s28, 64  ;;  %p448_p1 = scmp.lt.s32.totalorder %s391_s28, %s391_s28 }
  0x15   :  { %436 = vmatpush3.bf16.msra.mxu1 %v435_v51  ;;  %p444_p0 = scmp.ne.s32.totalorder %s391_s28, %s443_s29  ;;  %p449_p2 = scmp.lt.s32.totalorder %s443_s29, %s443_s29 }
  0x17   :  { %68 = vadd.xlane.f32.xlu1 %v67_v22  ;;  %p450_p3 = por %p449_p2, %p448_p1 }
  0x18   :  { %62 = vadd.xlane.f32.xlu0 %v61_v23 }
  0x19   :  { %p451_p4 = pnand %p450_p3, %p444_p0 }
  0x1b   :  { %65 = vadd.xlane.f32.xlu1 %v64_v26 }
  0x1c   :  { %71 = vadd.xlane.f32.xlu0 %v70_v27 }
  0x1f   :  { %77 = vadd.xlane.f32.xlu1 %v76_v31 }
  0x20   :  { %74 = vadd.xlane.f32.xlu0 %v73_v30 }
  0x90   :  { %v45_v40 = vpop.xlane.xlu1 %44 }
  0x91   :  { %v33_v41 = vpop.xlane.xlu0 %32  ;;  %v83_v57 = vmul.f32 0.015625, %v45_v40 }
  0x92   :  { %v79_v61 = vmul.f32 0.015625, %v33_v41 }
  0x93   :  { %v147_v9 = vrot.slane %v83_v57, %v121_v55 }
  0x94   :  { %v48_v42 = vpop.xlane.xlu1 %47  ;;  %v122_v11 = vrot.slane %v79_v61, %v121_v55 }
  0x95   :  { %v36_v43 = vpop.xlane.xlu0 %35  ;;  %v84_v59 = vmul.f32 0.015625, %v48_v42 }
  0x96   :  { %v80_v62 = vmul.f32 0.015625, %v36_v43 }
  0x97   :  { %v151_v10 = vrot.slane %v84_v59, %v126_v58 }
  0x98   :  { %v51_v44 = vpop.xlane.xlu1 %50  ;;  %v127_v12 = vrot.slane %v80_v62, %v126_v58 }
  0x99   :  { %v39_v45 = vpop.xlane.xlu0 %38  ;;  %v85_v63 = vmul.f32 0.015625, %v51_v44  ;;  %v152_v25 = vsel %vm128_vm2, %v151_v10, %v147_v9 }
  0x9a   :  { %v81_v0 = vmul.f32 0.015625, %v39_v45  ;;  %v129_v27 = vsel %vm128_vm2, %v127_v12, %v122_v11 }
  0x9b   :  { %v156_v13 = vrot.slane %v85_v63, %v133_v60 }
  0x9c   :  { %v60_v47 = vpop.xlane.xlu1 %59  ;;  %v134_v14 = vrot.slane %v81_v0, %v133_v60 }
  0x9d   :  { %v57_v48 = vpop.xlane.xlu0 %56  ;;  %v88_v3 = vmul.f32 0.015625, %v60_v47  ;;  %v157_v28 = vsel %vm135_vm3, %v156_v13, %v152_v25 }
  0x9e   :  { %v87_v4 = vmul.f32 0.015625, %v57_v48  ;;  %v136_v32 = vsel %vm135_vm3, %v134_v14, %v129_v27 }
  0x9f   :  { %v170_v17 = vrot.slane %v88_v3, %v126_v58 }
  0xa0   :  { %v54_v53 = vpop.xlane.xlu1 %53  ;;  %v166_v18 = vrot.slane %v87_v4, %v121_v55 }
  0xa1   :  { %v42_v54 = vpop.xlane.xlu0 %41  ;;  %v86_v6 = vmul.f32 0.015625, %v54_v53 }
  0xa2   :  { %v82_v7 = vmul.f32 0.015625, %v42_v54  ;;  %v171_v33 = vsel %vm128_vm2, %v170_v17, %v166_v18 }
  0xa3   :  { %v161_v21 = vrot.slane %v86_v6, %v140_v5 }
  0xa4   :  { %v69_v1 = vpop.xlane.xlu1 %68  ;;  %v141_v22 = vrot.slane %v82_v7, %v140_v5 }
  0xa5   :  { %v63_v2 = vpop.xlane.xlu0 %62  ;;  %v91_v23 = vmul.f32 0.015625, %v69_v1  ;;  %v162_v36 = vsel %vm142_vm4, %v161_v21, %v157_v28 }
  0xa6   :  { %v89_v8 = vmul.f32 0.015625, %v63_v2  ;;  %v143_v37 = vsel %vm142_vm4, %v141_v22, %v136_v32 }
  0xa7   :  { %v185_v38 = vrot.slane %v91_v23, %v121_v55  ;;  %v202_v45 = vsel %vm201_vm5, %v162_v36, %v143_v37 }
  0xa8   :  { %v66_v15 = vpop.xlane.xlu1 %65  ;;  %v175_v24 = vrot.slane %v89_v8, %v133_v60 }
  0xa9   :  { %v72_v16 = vpop.xlane.xlu0 %71  ;;  %v90_v19 = vmul.f32 0.015625, %v66_v15 }
  0xaa   :  { %v92_v20 = vmul.f32 0.015625, %v72_v16  ;;  %v176_v39 = vsel %vm135_vm3, %v175_v24, %v171_v33 }
  0xab   :  { %v180_v26 = vrot.slane %v90_v19, %v140_v5 }
  0xac   :  { %v189_v29 = vrot.slane %v92_v20, %v126_v58  ;;  %v78_v31 = vpop.xlane.xlu1 %77 }
  0xad   :  { %v75_v30 = vpop.xlane.xlu0 %74  ;;  %v94_v35 = vmul.f32 0.015625, %v78_v31  ;;  %v181_v40 = vsel %vm142_vm4, %v180_v26, %v176_v39 }
  0xae   :  { %v93_v34 = vmul.f32 0.015625, %v75_v30  ;;  %v190_v43 = vsel %vm128_vm2, %v189_v29, %v185_v38  ;;  %v204_v47 = vsel %vm203_vm6, %v181_v40, %v202_v45 }
  0xaf   :  { %v199_v42 = vrot.slane %v94_v35, %v140_v5 }
  0xb0   :  { %v194_v41 = vrot.slane %v93_v34, %v133_v60 }
  0xb2   :  { %v195_v44 = vsel %vm135_vm3, %v194_v41, %v190_v43 }
  0xb3   :  { %v200_v46 = vsel %vm142_vm4, %v199_v42, %v195_v44 }
  0xb4   :  { %v206_v48 = vsel %vm205_vm7, %v200_v46, %v204_v47 }
  0xb5   :  { %419 = vmatmul.mubr.msk.f32.vlgmr.msra.gmra.mrb[0].mxu0 %vm207_vm8, %v206_v48  ;;  %381 = vst.msk [vmem:[#allocation2] sm:$0xf] %vm380_vm9, %v206_v48 }
 0x188   :  { %v276_v52 = vpop.f32.mrb[0].mxu0 }
 0x189   :  { %v281_v53 = vsel %vm280_vm10, %v276_v52, 0.0  ;;  %v420_v54 = vpop.f32.mrb[1].mxu0 }
 0x18a   :  { %v282_v55 = vrot.slane %v281_v53, 4 }
 0x18c   :  { %v283_v56 = vadd.f32 %v282_v55, %v281_v53 }
 0x18e   :  { %v284_v57 = vrot.slane %v283_v56, 2 }
 0x190   :  { %v285_v58 = vadd.f32 %v284_v57, %v283_v56 }
 0x192   :  { %v286_v59 = vrot.slane %v285_v58, 1 }
 0x194   :  { %v287_v60 = vadd.f32 %v286_v59, %v285_v58 }
 0x196   :  { %v289_v61 = vmul.f32 0.25, %v287_v60 }
 0x198   :  { %v290_v62 = vsub.f32 %v276_v52, %v289_v61 }
 0x19a   :  { %v291_v63 = vmul.f32 %v290_v62, %v290_v62 }
 0x19c   :  { %v292_v0 = vsel %vm280_vm10, %v291_v63, 0.0 }
 0x19d   :  { %v293_v1 = vrot.slane %v292_v0, 4 }
 0x19f   :  { %v294_v2 = vadd.f32 %v293_v1, %v292_v0 }
 0x1a1   :  { %v295_v3 = vrot.slane %v294_v2, 2 }
 0x1a3   :  { %v296_v4 = vadd.f32 %v295_v3, %v294_v2 }
 0x1a5   :  { %v297_v5 = vrot.slane %v296_v4, 1 }
 0x1a7   :  { %v298_v6 = vadd.f32 %v297_v5, %v296_v4 }
 0x1a9   :  { %v299_v7 = vmul.f32 0.25, %v298_v6 }
 0x1ab   :  { %v300_v8 = vadd.f32 1e-05, %v299_v7 }
 0x1ad   :  { %441 = vrsqrt.f32 %v300_v8 }
 0x1b7   :  { %v442_v9 = vpop.eup %441 }
 0x1b8   :  { %v302_v10 = vmul.f32 %v442_v9, %v290_v62 }
 0x1ba   :  { %426 = vmatmul.mubr.msk.f32.vlgmr.msra.gmra.mrb[0].mxu1 %vm303_vm11, %v302_v10 }
 0x1bb   :  { %454 = shalt.err (!%p451_p4)
}
 0x1bc   :  { %s455_s5 = scalar_lea.hbm %s604_s3, 64 }
 0x1bd   :  { %p456_p5 = scmp.ne.s32.totalorder %s604_s3, %s455_s5  ;;  %p459_p6 = scmp.lt.u32.totalorder %s455_s5, %s604_s3 }
 0x1bf   :  { %p461_p7 = pnand %p459_p6, %p456_p5 }
 0x1c1   :  { %464 = shalt.err (!%p461_p7)
}
 0x1c2   :  { %393 = dma.vmem_to_hbm [thread:$0]  %s391_s28, 64, %s604_s3, [#allocation3]   ;;  %vm377_vm12 = vcmask 191488  }
 0x28d   :  { %v373_v11 = vpop.f32.mrb[0].mxu1 }
 0x28e   :  { %378 = vst.msk [vmem:[%s603_s2] sm:$0xf] %vm377_vm12, %v373_v11  ;;  %v427_v12 = vpop.f32.mrb[1].mxu1 }
 0x28f   :  { %465 = dma.done.wait [#allocation3], 64  }
 0x290   :  { %466 = vsyncadd [#allocation3], 4294967232 }
 0x291   :  { %399 = vsyncpa [#allocation3], 1 }

</bundles_post_ra>
